<compile_context>
chip_gen: v7x
topology: tpu7x:2x2x1
jax: 0.10.0
libtpu: 0.0.40
codegen_flags: <defaults>
</compile_context>

<pallas_src>
import jax
import jax.numpy as jnp
from jax import lax
from jax.experimental import pallas as pl
from jax.experimental.pallas import tpu as pltpu

MAX_LEN = 362                      # hard-coded in the PyTorch module
MASK_PAD = ((MAX_LEN + 127) // 128) * 128   # 384: lane-dense store width


def _round_up(n, m):
    return ((n + m - 1) // m) * m


def _length_mask_kernel(x_ref, mask_ref):
    """Batched kernel: TB samples per grid step.

    x_ref    : (TB, T, D) float32      -- TB samples' time series
    mask_ref : (TB, MASK_PAD) int32    -- 1 where t < length, else 0
                                          (lane-dense padded width, sliced
                                           back to MAX_LEN in the wrapper)
    """
    x = x_ref[...]                                    # (TB, T, D)
    tb, t_len, _ = x.shape
    mask_w = mask_ref.shape[-1]

    # A timepoint is "nonzero" if any feature differs from 0 (NaN counts as
    # nonzero, matching np.all(timepoint == 0) == False).
    nonzero_row = jnp.any(x != 0.0, axis=-1)          # (TB, T) bool

    # length[b] = smallest t with an all-zero row, else T (mirrors the python
    # "break at first all-zero timepoint" loop).  iotas are built once per
    # block and shared by all TB rows.
    t_idx = lax.broadcasted_iota(jnp.int32, (tb, t_len), dimension=1)
    candidates = jnp.where(nonzero_row, jnp.int32(t_len), t_idx)   # (TB, T)
    length = jnp.min(candidates, axis=1, keepdims=True)            # (TB, 1)

    # padding mask over the lane-dense padded width.
    m_idx = lax.broadcasted_iota(jnp.int32, (tb, mask_w), dimension=1)
    mask_ref[...] = (m_idx < length).astype(jnp.int32)


def _choose_tile_b(batch, t_len, d, budget_bytes=8 << 20):
    """Pick TB (multiple of 8, <= 64) so the double-buffered, lane-padded
    input tile stays within a conservative VMEM budget (safe on v7x's 64 MiB
    physical / 32 MiB scoped VMEM)."""
    padded_t = _round_up(t_len, 8)
    padded_d = _round_up(d, 128)        # D < 128 still occupies 128 lanes
    per_sample = padded_t * padded_d * 4
    tb = budget_bytes // (2 * per_sample)           # 2x for double-buffering
    tb = max(8, min(64, (tb // 8) * 8))
    b8 = _round_up(batch, 8)
    tb = min(tb, b8)
    # Prefer >= 2 grid steps when the batch allows it so v7x's two
    # TensorCores both get work (no effect on v5e/v6e).
    if b8 >= 16:
        tb = min(tb, max(8, (b8 // 2) // 8 * 8))
    return tb


def model_wrapper_forward(x, max_len=MAX_LEN):
    """Pallas implementation of ModelWrapper.forward's own compute.

    Args:
      x: float32 [B, T, D] time series (zero rows == padding).
    Returns:
      lengths:       int16 [B]          -- per-sample valid length
      padding_masks: bool  [B, max_len] -- True for valid (unpadded) positions
    """
    B, T, D = x.shape
    mask_pad = _round_up(max_len, 128)

    tb = _choose_tile_b(B, T, D)
    b_pad = _round_up(B, tb)
    if b_pad > B:
        # Dummy zero samples -> length 0 -> all-zero mask rows (sliced off).
        x = jnp.pad(x, ((0, b_pad - B), (0, 0), (0, 0)))

    mask_i32 = pl.pallas_call(
        _length_mask_kernel,
        out_shape=jax.ShapeDtypeStruct((b_pad, mask_pad), jnp.int32),
        grid_spec=pltpu.PrefetchScalarGridSpec(
            num_scalar_prefetch=0,
            grid=(b_pad // tb,),
            in_specs=[
                # (TB, T, D): last two dims equal the full array dims, so no
                # (8,128) divisibility constraint on them.
                pl.BlockSpec((tb, T, D), lambda b: (b, 0, 0)),
            ],
            out_specs=pl.BlockSpec((tb, mask_pad), lambda b: (b, 0)),
        ),
        compiler_params=pltpu.CompilerParams(
            dimension_semantics=("parallel",),
            vmem_limit_bytes=32 * 1024 * 1024,
        ),
    )(x)

    mask_full = mask_i32[:B]                         # (B, mask_pad)
    padding_masks = mask_full[:, :max_len].astype(jnp.bool_)
    # lengths derived from the mask; exact whenever length <= max_len (for
    # T > max_len this saturates at max_len, which is all the module's mask
    # semantics ever use).  PyTorch used dtype=torch.int16.
    lengths = jnp.sum(mask_full, axis=1).astype(jnp.int16)
    return lengths, padding_masks


def _reference(x, max_len=MAX_LEN):
    """Pure-numpy reference mirroring the PyTorch loop."""
    import numpy as np
    x = np.asarray(x)
    lengths = []
    for sample in x:
        i = 0
        for timepoint in sample:
            if np.all(timepoint == 0):
                break
            i += 1
        lengths.append(i)
    lengths = np.asarray(lengths, dtype=np.int16)
    mask = np.arange(max_len)[None, :] < lengths[:, None]
    return lengths, mask


if __name__ == "__main__":
    import numpy as np

    # Small deterministic input consistent with the module: [B, T, D] with
    # zero-padded tails per sample.
    B, T, D = 2, 16, 8
    key = jax.random.PRNGKey(0)
    x = jax.random.normal(key, (B, T, D), dtype=jnp.float32)

    # Zero out the padded tail of each sample (valid lengths 10 and 5).
    valid = np.array([10, 5], dtype=np.int32)
    pad_mask = (np.arange(T)[None, :] < valid[:, None]).astype(np.float32)
    x = x * jnp.asarray(pad_mask)[:, :, None]
    # Ensure no "accidental" all-zero row inside the valid region.
    x = jnp.where(jnp.asarray(pad_mask)[:, :, None] > 0,
                  jnp.where(x == 0.0, 1e-3, x), x)

    lengths, masks = model_wrapper_forward(x)
    jax.block_until_ready((lengths, masks))

    ref_lengths, ref_masks = _reference(x)
    assert np.array_equal(np.asarray(lengths), ref_lengths), (lengths, ref_lengths)
    assert np.array_equal(np.asarray(masks), ref_masks)

    print("KERNEL_OK")
</pallas_src>

<mosaic_0001>
module attributes {stable_mosaic.version = 11 : i64} {
  func.func @_length_mask_kernel(%arg0: i32, %arg1: memref<8x16x8xf32, #tpu.memory_space<vmem>>, %arg2: memref<8x384xi32, #tpu.memory_space<vmem>>) attributes {dimension_semantics = [#tpu.dimension_semantics<parallel>], iteration_bounds = array<i64: 1>, scalar_prefetch = 0 : i64, scratch_operands = 0 : i64, tpu.core_type = #tpu.core_type<tc>, window_params = [{transform_indices = @transform_0, window_bounds = array<i64: 8, 16, 8>}, {transform_indices = @transform_1, window_bounds = array<i64: 8, 384>}]} {
    %c0 = arith.constant 0 : index
    %c0_0 = arith.constant 0 : index
    %c0_1 = arith.constant 0 : index
    %0 = vector.load %arg1[%c0, %c0_0, %c0_1] : memref<8x16x8xf32, #tpu.memory_space<vmem>>, vector<8x16x8xf32>
    %cst = arith.constant 0.000000e+00 : f32
    %1 = vector.broadcast %cst : f32 to vector<8x16x8xf32>
    %2 = arith.cmpf one, %0, %1 : vector<8x16x8xf32>
    %cst_2 = arith.constant 1.000000e+00 : f32
    %cst_3 = arith.constant 0.000000e+00 : f32
    %3 = vector.broadcast %cst_2 : f32 to vector<8x16x8xf32>
    %4 = vector.broadcast %cst_3 : f32 to vector<8x16x8xf32>
    %5 = arith.select %2, %3, %4 : vector<8x16x8xi1>, vector<8x16x8xf32>
    %cst_4 = arith.constant dense<0xFF800000> : vector<8x16xf32>
    %6 = vector.multi_reduction <maximumf>, %5, %cst_4 [2] : vector<8x16x8xf32> to vector<8x16xf32>
    %cst_5 = arith.constant 0.000000e+00 : f32
    %7 = vector.broadcast %cst_5 : f32 to vector<8x16xf32>
    %8 = arith.cmpf ogt, %6, %7 : vector<8x16xf32>
    %9 = tpu.iota {dimensions = array<i32: 1>} : vector<8x16xi32>
    %c16_i32 = arith.constant 16 : i32
    %10 = vector.broadcast %c16_i32 : i32 to vector<8x16xi32>
    %11 = arith.select %8, %10, %9 : vector<8x16xi1>, vector<8x16xi32>
    %cst_6 = arith.constant dense<2147483647> : vector<8xi32>
    %12 = vector.multi_reduction <minsi>, %11, %cst_6 [1] : vector<8x16xi32> to vector<8xi32>
    %13 = vector.shape_cast %12 : vector<8xi32> to vector<8x1xi32>
    %14 = tpu.iota {dimensions = array<i32: 1>} : vector<8x384xi32>
    %15 = vector.broadcast %13 : vector<8x1xi32> to vector<8x384xi32>
    %16 = arith.cmpi slt, %14, %15 : vector<8x384xi32>
    %17 = arith.extui %16 : vector<8x384xi1> to vector<8x384xi32>
    %c0_7 = arith.constant 0 : index
    %c0_8 = arith.constant 0 : index
    %18 = vector.load %arg2[%c0_7, %c0_8] : memref<8x384xi32, #tpu.memory_space<vmem>>, vector<8x384xi32>
    tpu.vector_store %arg2[%c0_7, %c0_8], %17 {strides = array<i32>} : memref<8x384xi32, #tpu.memory_space<vmem>>, vector<8x384xi32>,
    return
  }
  func.func @transform_0(%arg0: i32) -> (i32, i32, i32) {
    %c0_i32 = arith.constant 0 : i32
    %c0_i32_0 = arith.constant 0 : i32
    %c0_i32_1 = arith.constant 0 : i32
    return %arg0, %c0_i32, %c0_i32_0 : i32, i32, i32
  }
  func.func @transform_1(%arg0: i32) -> (i32, i32) {
    %c0_i32 = arith.constant 0 : i32
    %c0_i32_0 = arith.constant 0 : i32
    return %arg0, %c0_i32 : i32, i32
  }
}

</mosaic_0001>

<bundles_post_ra>
// kernel: tpu_custom_call.1
= control target key start
LH: loop header
LB: loop body
LE: loop exit
PB: predicated region body
PF: predicated region fallthrough
CT: control target
= control target key end

     0   :  { %vm57_vm0 = vcmask 64512   ;;  %v353_v6 = vmov 0.0   ;;  %s482_s0 = inlined_call_operand.vmem [shape: f32[8,16,8], index: 0, kind: input, shape index: {}]   ;;  %s483_s1 = inlined_call_operand.hbm [shape: s32[8,384], index: 1, kind: output, shape index: {}]  }
   0x1   :  { %v11_v0 = vld [vmem:[%s482_s0 + $0x10] sm:$0xff]  ;;  %v9_v1 = vld [vmem:[%s482_s0] sm:$0xff]  ;;  %v12_v2 = vld [vmem:[%s482_s0 + $0x18] sm:$0xff] }
   0x2   :  { %vm27_vm1 = vcmp.ne.f32.partialorder %v11_v0, 0.0  ;;  %vm25_vm2 = vcmp.ne.f32.partialorder %v9_v1, 0.0  ;;  %vm28_vm3 = vcmp.ne.f32.partialorder %v12_v2, 0.0  ;;  %v10_v3 = vld [vmem:[%s482_s0 + $0x8] sm:$0xff]  ;;  %v13_v5 = vld [vmem:[%s482_s0 + $0x20] sm:$0xff]  ;;  %v16_v13 = vld [vmem:[%s482_s0 + $0x38] sm:$0xff] }
   0x3   :  { %v14_v4 = vld [vmem:[%s482_s0 + $0x28] sm:$0xff]  ;;  %v43_v7 = vsel %vm27_vm1, 1.0, %v353_v6  ;;  %v41_v8 = vsel %vm25_vm2, 1.0, %v353_v6  ;;  %v44_v9 = vsel %vm28_vm3, 1.0, %v353_v6  ;;  %vm26_vm4 = vcmp.ne.f32.partialorder %v10_v3, 0.0  ;;  %v15_v14 = vld [vmem:[%s482_s0 + $0x30] sm:$0xff] }
   0x4   :  { %v64_v10 = vsel %vm57_vm0, %v43_v7, -inf  ;;  %v58_v11 = vsel %vm57_vm0, %v41_v8, -inf  ;;  %v42_v12 = vsel %vm26_vm4, 1.0, %v353_v6  ;;  %vm30_vm5 = vcmp.ne.f32.partialorder %v14_v4, 0.0 }
   0x5   :  { %65 = vmax.xlane.f32.xlu1 %v64_v10  ;;  %59 = vmax.xlane.f32.xlu0 %v58_v11  ;;  %vm29_vm6 = vcmp.ne.f32.partialorder %v13_v5, 0.0  ;;  %v67_v15 = vsel %vm57_vm0, %v44_v9, -inf  ;;  %v61_v16 = vsel %vm57_vm0, %v42_v12, -inf  ;;  %v46_v17 = vsel %vm30_vm5, 1.0, %v353_v6 }
   0x6   :  { %v45_v18 = vsel %vm29_vm6, 1.0, %v353_v6  ;;  %vm32_vm7 = vcmp.ne.f32.partialorder %v16_v13, 0.0  ;;  %vm31_vm8 = vcmp.ne.f32.partialorder %v15_v14, 0.0 }
   0x7   :  { %6 = vsyncpa [#allocation3], 0  ;;  %v18_v19 = vld [vmem:[%s482_s0 + $0x48] sm:$0xff]  ;;  %v17_v20 = vld [vmem:[%s482_s0 + $0x40] sm:$0xff]  ;;  %v73_v21 = vsel %vm57_vm0, %v46_v17, -inf  ;;  %v70_v22 = vsel %vm57_vm0, %v45_v18, -inf  ;;  %v122_v49 = vlaneseq }
   0x8   :  { %v48_v23 = vsel %vm32_vm7, 1.0, %v353_v6  ;;  %v47_v24 = vsel %vm31_vm8, 1.0, %v353_v6  ;;  %vm34_vm9 = vcmp.ne.f32.partialorder %v18_v19, 0.0  ;;  %vm33_vm10 = vcmp.ne.f32.partialorder %v17_v20, 0.0  ;;  %v20_v25 = vld [vmem:[%s482_s0 + $0x58] sm:$0xff]  ;;  %v19_v26 = vld [vmem:[%s482_s0 + $0x50] sm:$0xff] }
   0x9   :  { %68 = vmax.xlane.f32.xlu1 %v67_v15  ;;  %62 = vmax.xlane.f32.xlu0 %v61_v16  ;;  %v79_v27 = vsel %vm57_vm0, %v48_v23, -inf  ;;  %v76_v28 = vsel %vm57_vm0, %v47_v24, -inf  ;;  %v50_v29 = vsel %vm34_vm9, 1.0, %v353_v6  ;;  %v49_v30 = vsel %vm33_vm10, 1.0, %v353_v6  ;;  %v22_v31 = vld [vmem:[%s482_s0 + $0x68] sm:$0xff]  ;;  %v21_v32 = vld [vmem:[%s482_s0 + $0x60] sm:$0xff] }
   0xa   :  { %vm36_vm11 = vcmp.ne.f32.partialorder %v20_v25, 0.0  ;;  %vm35_vm12 = vcmp.ne.f32.partialorder %v19_v26, 0.0  ;;  %v85_v33 = vsel %vm57_vm0, %v50_v29, -inf  ;;  %v82_v34 = vsel %vm57_vm0, %v49_v30, -inf  ;;  %v24_v37 = vld [vmem:[%s482_s0 + $0x78] sm:$0xff]  ;;  %v23_v38 = vld [vmem:[%s482_s0 + $0x70] sm:$0xff] }
   0xb   :  { %v52_v35 = vsel %vm36_vm11, 1.0, %v353_v6  ;;  %v51_v36 = vsel %vm35_vm12, 1.0, %v353_v6  ;;  %vm38_vm13 = vcmp.ne.f32.partialorder %v22_v31, 0.0  ;;  %vm37_vm14 = vcmp.ne.f32.partialorder %v21_v32, 0.0  ;;  %s355_s0 = smov [#allocation2]  }
   0xc   :  { %v91_v39 = vsel %vm57_vm0, %v52_v35, -inf  ;;  %v88_v40 = vsel %vm57_vm0, %v51_v36, -inf  ;;  %v54_v41 = vsel %vm38_vm13, 1.0, %v353_v6  ;;  %v53_v42 = vsel %vm37_vm14, 1.0, %v353_v6  ;;  %s316_s9 = sshll.u32 %s355_s0, 4  ;;  %s317_s9 = int_to_ptr.vmem [resolvable:$true] %s316_s9 }
   0xd   :  { %74 = vmax.xlane.f32.xlu1 %v73_v21  ;;  %71 = vmax.xlane.f32.xlu0 %v70_v22  ;;  %vm40_vm15 = vcmp.ne.f32.partialorder %v24_v37, 0.0  ;;  %vm39_vm1 = vcmp.ne.f32.partialorder %v23_v38, 0.0  ;;  %v97_v43 = vsel %vm57_vm0, %v54_v41, -inf  ;;  %v94_v44 = vsel %vm57_vm0, %v53_v42, -inf  ;;  %s329_s10 = scalar_lea.vmem %s317_s9, 384  ;;  %p334_p1 = scmp.lt.s32.totalorder %s317_s9, %s317_s9 }
   0xe   :  { %v56_v45 = vsel %vm40_vm15, 1.0, %v353_v6  ;;  %v55_v46 = vsel %vm39_vm1, 1.0, %v353_v6  ;;  %v447_v50 = vand.u32 127, %v122_v49  ;;  %v354_v51 = vmov 0   ;;  %p330_p0 = scmp.ne.s32.totalorder %s317_s9, %s329_s10  ;;  %p335_p2 = scmp.lt.s32.totalorder %s329_s10, %s329_s10 }
   0xf   :  { %v103_v47 = vsel %vm57_vm0, %v56_v45, -inf  ;;  %v100_v48 = vsel %vm57_vm0, %v55_v46, -inf  ;;  %328 = vset.pattern.permute.xlu0 %v354_v51  ;;  %327 = vset.pattern.permute.xlu1 %v354_v51  ;;  %v196_v31 = vshrl.u32 %v122_v49, 7 }
  0x10   :  { %v199_v32 = vadd.s32 4294967288, %v447_v50  ;;  %p336_p3 = por %p335_p2, %p334_p1 }
  0x11   :  { %80 = vmax.xlane.f32.xlu1 %v79_v27  ;;  %77 = vmax.xlane.f32.xlu0 %v76_v28  ;;  %v197_v35 = vsub.s32 %v447_v50, %v196_v31 }
  0x12   :  { %v202_v36 = vsub.s32 %v199_v32, %v196_v31  ;;  %p337_p4 = pnand %p336_p3, %p330_p0 }
  0x15   :  { %86 = vmax.xlane.f32.xlu1 %v85_v33  ;;  %83 = vmax.xlane.f32.xlu0 %v82_v34 }
  0x19   :  { %92 = vmax.xlane.f32.xlu1 %v91_v39  ;;  %89 = vmax.xlane.f32.xlu0 %v88_v40 }
  0x1d   :  { %98 = vmax.xlane.f32.xlu1 %v97_v43  ;;  %95 = vmax.xlane.f32.xlu0 %v94_v44 }
  0x21   :  { %104 = vmax.xlane.f32.xlu1 %v103_v47  ;;  %101 = vmax.xlane.f32.xlu0 %v100_v48 }
  0x32   :  { %129 = vbcast.lane.b32.xlu1 %v447_v50, 264 }
  0x37   :  { %125 = vbcast.lane.b32.xlu0 %v447_v50, 256 }
  0x92   :  { %v66_v52 = vpop.xlane.xlu1 %65  ;;  %v60_v53 = vpop.xlane.xlu0 %59 }
  0x93   :  { %vm108_vm0 = vcmp.gt.f32.partialorder %v66_v52, 0.0  ;;  %vm106_vm2 = vcmp.gt.f32.partialorder %v60_v53, 0.0 }
  0x96   :  { %v69_v54 = vpop.xlane.xlu1 %68  ;;  %v63_v55 = vpop.xlane.xlu0 %62 }
  0x97   :  { %vm107_vm3 = vcmp.gt.f32.partialorder %v63_v55, 0.0  ;;  %vm109_vm5 = vcmp.gt.f32.partialorder %v69_v54, 0.0 }
  0x9a   :  { %v75_v56 = vpop.xlane.xlu1 %74  ;;  %v72_v57 = vpop.xlane.xlu0 %71 }
  0x9b   :  { %vm111_vm4 = vcmp.gt.f32.partialorder %v75_v56, 0.0  ;;  %vm110_vm7 = vcmp.gt.f32.partialorder %v72_v57, 0.0 }
  0x9e   :  { %v81_v58 = vpop.xlane.xlu1 %80  ;;  %v78_v59 = vpop.xlane.xlu0 %77 }
  0x9f   :  { %vm113_vm6 = vcmp.gt.f32.partialorder %v81_v58, 0.0  ;;  %vm112_vm9 = vcmp.gt.f32.partialorder %v78_v59, 0.0 }
  0xa2   :  { %v87_v60 = vpop.xlane.xlu1 %86  ;;  %v84_v61 = vpop.xlane.xlu0 %83 }
  0xa3   :  { %vm115_vm8 = vcmp.gt.f32.partialorder %v87_v60, 0.0  ;;  %vm114_vm11 = vcmp.gt.f32.partialorder %v84_v61, 0.0 }
  0xa6   :  { %v93_v62 = vpop.xlane.xlu1 %92  ;;  %v90_v63 = vpop.xlane.xlu0 %89 }
  0xa7   :  { %vm117_vm10 = vcmp.gt.f32.partialorder %v93_v62, 0.0  ;;  %vm116_vm14 = vcmp.gt.f32.partialorder %v90_v63, 0.0 }
  0xaa   :  { %v99_v0 = vpop.xlane.xlu1 %98  ;;  %v96_v1 = vpop.xlane.xlu0 %95 }
  0xab   :  { %vm119_vm12 = vcmp.gt.f32.partialorder %v99_v0, 0.0  ;;  %vm118_vm15 = vcmp.gt.f32.partialorder %v96_v1, 0.0 }
  0xae   :  { %v105_v2 = vpop.xlane.xlu1 %104  ;;  %v102_v3 = vpop.xlane.xlu0 %101 }
  0xaf   :  { %vm121_vm13 = vcmp.gt.f32.partialorder %v105_v2, 0.0  ;;  %vm120_vm1 = vcmp.gt.f32.partialorder %v102_v3, 0.0 }
  0xb2   :  { %v126_v4 = vpop.permute.xlu0 %125  ;;  %v130_v7 = vpop.permute.xlu1 %129 }
  0xb3   :  { %v133_v5 = vsel %vm108_vm0, 16, %v126_v4  ;;  %v131_v6 = vsel %vm106_vm2, 16, %v126_v4  ;;  %v136_v8 = vsel %vm111_vm4, 16, %v130_v7  ;;  %v132_v9 = vsel %vm107_vm3, 16, %v130_v7 }
  0xb4   :  { %154 = vperm.xlu0 %328, %v133_v5   ;;  %148 = vperm.xlu1 %327, %v131_v6   ;;  %v138_v10 = vsel %vm113_vm6, 16, %v130_v7  ;;  %v134_v11 = vsel %vm109_vm5, 16, %v130_v7  ;;  %v140_v12 = vsel %vm115_vm8, 16, %v130_v7  ;;  %v135_v13 = vsel %vm110_vm7, 16, %v126_v4 }
  0xb5   :  { %v142_v14 = vsel %vm117_vm10, 16, %v130_v7  ;;  %v137_v15 = vsel %vm112_vm9, 16, %v126_v4  ;;  %v144_v16 = vsel %vm119_vm12, 16, %v130_v7  ;;  %v139_v17 = vsel %vm114_vm11, 16, %v126_v4 }
  0xb6   :  { %v146_v18 = vsel %vm121_vm13, 16, %v130_v7  ;;  %v141_v19 = vsel %vm116_vm14, 16, %v126_v4  ;;  %v143_v20 = vsel %vm118_vm15, 16, %v126_v4  ;;  %v145_v21 = vsel %vm120_vm1, 16, %v126_v4 }
  0xb7   :  { %vm204_vm0 = vcmask 130112   ;;  %vm269_vm2 = vcmask 1041409   ;;  %vm271_vm3 = vcmask 1042434   ;;  %vm273_vm4 = vcmask 1043459  }
  0xb8   :  { %163 = vperm.xlu0 %328, %v136_v8   ;;  %151 = vperm.xlu1 %327, %v132_v9   ;;  %vm275_vm5 = vcmask 1044484   ;;  %vm277_vm6 = vcmask 1045509   ;;  %vm279_vm7 = vcmask 1046534   ;;  %vm281_vm8 = vcmask 1047559  }
  0xb9   :  { %vm283_vm9 = vcmask 130048  }
  0xbc   :  { %169 = vperm.xlu0 %328, %v138_v10   ;;  %157 = vperm.xlu1 %327, %v134_v11  }
  0xc0   :  { %175 = vperm.xlu0 %328, %v140_v12   ;;  %160 = vperm.xlu1 %327, %v135_v13  }
  0xc4   :  { %181 = vperm.xlu0 %328, %v142_v14   ;;  %166 = vperm.xlu1 %327, %v137_v15  }
  0xc8   :  { %187 = vperm.xlu0 %328, %v144_v16   ;;  %172 = vperm.xlu1 %327, %v139_v17  }
  0xcc   :  { %193 = vperm.xlu0 %328, %v146_v18   ;;  %178 = vperm.xlu1 %327, %v141_v19  }
  0xd0   :  { %184 = vperm.xlu1 %327, %v143_v20  }
  0xd4   :  { %190 = vperm.xlu1 %327, %v145_v21   ;;  %v299_v21 = vadd.s32 128, %v447_v50 }
 0x133   :  { %v155_v22 = vpop.permute.xlu0 %154  ;;  %v149_v23 = vpop.permute.xlu1 %148 }
 0x134   :  { %v209_v41 = vrot.slane %v155_v22, %v197_v35  ;;  %v198_v46 = vrot.slane %v149_v23, %v197_v35  ;;  %v300_v22 = vadd.s32 256, %v447_v50 }
 0x137   :  { %v164_v24 = vpop.permute.xlu0 %163  ;;  %v152_v25 = vpop.permute.xlu1 %151 }
 0x138   :  { %v203_v42 = vrot.slane %v152_v25, %v202_v36  ;;  %v222_v44 = vrot.slane %v164_v24, %v202_v36 }
 0x13a   :  { %v205_v55 = vsel %vm204_vm0, %v203_v42, %v198_v46 }
 0x13b   :  { %v170_v26 = vpop.permute.xlu0 %169  ;;  %v158_v27 = vpop.permute.xlu1 %157 }
 0x13c   :  { %v213_v37 = vrot.slane %v158_v27, %v202_v36  ;;  %v231_v47 = vrot.slane %v170_v26, %v202_v36 }
 0x13e   :  { %v214_v48 = vsel %vm204_vm0, %v213_v37, %v209_v41 }
 0x13f   :  { %v176_v28 = vpop.permute.xlu0 %175  ;;  %v161_v29 = vpop.permute.xlu1 %160  ;;  %v270_v59 = vsel %vm269_vm2, %v214_v48, %v205_v55 }
 0x140   :  { %v218_v38 = vrot.slane %v161_v29, %v197_v35  ;;  %v240_v52 = vrot.slane %v176_v28, %v202_v36 }
 0x142   :  { %v223_v53 = vsel %vm204_vm0, %v222_v44, %v218_v38 }
 0x143   :  { %v167_v30 = vpop.permute.xlu1 %166  ;;  %v182_v33 = vpop.permute.xlu0 %181  ;;  %v272_v63 = vsel %vm271_vm3, %v223_v53, %v270_v59 }
 0x144   :  { %v227_v43 = vrot.slane %v167_v30, %v197_v35  ;;  %v249_v56 = vrot.slane %v182_v33, %v202_v36 }
 0x146   :  { %v232_v57 = vsel %vm204_vm0, %v231_v47, %v227_v43 }
 0x147   :  { %v173_v34 = vpop.permute.xlu1 %172  ;;  %v188_v39 = vpop.permute.xlu0 %187  ;;  %v274_v1 = vsel %vm273_vm4, %v232_v57, %v272_v63 }
 0x148   :  { %v236_v45 = vrot.slane %v173_v34, %v197_v35  ;;  %v258_v60 = vrot.slane %v188_v39, %v202_v36 }
 0x14a   :  { %v241_v61 = vsel %vm204_vm0, %v240_v52, %v236_v45 }
 0x14b   :  { %v179_v40 = vpop.permute.xlu1 %178  ;;  %v194_v62 = vpop.permute.xlu0 %193  ;;  %v276_v4 = vsel %vm275_vm5, %v241_v61, %v274_v1 }
 0x14c   :  { %v245_v49 = vrot.slane %v179_v40, %v197_v35  ;;  %v267_v5 = vrot.slane %v194_v62, %v202_v36 }
 0x14e   :  { %v250_v0 = vsel %vm204_vm0, %v249_v56, %v245_v49 }
 0x14f   :  { %v185_v54 = vpop.permute.xlu1 %184  ;;  %v278_v7 = vsel %vm277_vm6, %v250_v0, %v276_v4 }
 0x150   :  { %v254_v58 = vrot.slane %v185_v54, %v197_v35 }
 0x152   :  { %v259_v2 = vsel %vm204_vm0, %v258_v60, %v254_v58 }
 0x153   :  { %v191_v3 = vpop.permute.xlu1 %190  ;;  %v280_v9 = vsel %vm279_vm7, %v259_v2, %v278_v7 }
 0x154   :  { %v263_v6 = vrot.slane %v191_v3, %v197_v35 }
 0x156   :  { %v268_v8 = vsel %vm204_vm0, %v267_v5, %v263_v6 }
 0x157   :  { %v282_v10 = vsel %vm281_vm8, %v268_v8, %v280_v9 }
 0x158   :  { %v284_v11 = vsel %vm283_vm9, %v282_v10, 2147483647 }
 0x159   :  { %v286_v12 = vshra.s32 %v284_v11, 16  ;;  %v285_v14 = vand.u32 65535, %v284_v11 }
 0x15b   :  { %v288_v13 = vcvt.s32.f32 %v286_v12  ;;  %v287_v16 = vcvt.s32.f32 %v285_v14 }
 0x15d   :  { %289 = vmin.xlane.f32.xlu1 %v288_v13 }
 0x1ea   :  { %v290_v15 = vpop.xlane.xlu1 %289 }
 0x1eb   :  { %vm291_vm10 = vcmp.eq.f32.partialorder %v288_v13, %v290_v15  ;;  %v296_v18 = vcvt.f32.s32 %v290_v15 }
 0x1ec   :  { %v292_v17 = vsel %vm291_vm10, %v287_v16, inf }
 0x1ed   :  { %293 = vmin.xlane.f32.xlu0 %v292_v17  ;;  %v297_v20 = vshll.u32 %v296_v18, 16 }
 0x27a   :  { %v294_v19 = vpop.xlane.xlu0 %293 }
 0x27b   :  { %v295_v23 = vcvt.f32.s32 %v294_v19 }
 0x27d   :  { %v298_v24 = vadd.s32 %v297_v20, %v295_v23 }
 0x27f   :  { %vm301_vm11 = vcmp.lt.s32.totalorder %v447_v50, %v298_v24  ;;  %vm302_vm12 = vcmp.lt.s32.totalorder %v299_v21, %v298_v24  ;;  %vm303_vm13 = vcmp.lt.s32.totalorder %v300_v22, %v298_v24 }
 0x280   :  { %v304_v25 = vsel %vm301_vm11, 1, %v354_v51  ;;  %v305_v26 = vsel %vm302_vm12, 1, %v354_v51  ;;  %v306_v27 = vsel %vm303_vm13, 1, %v354_v51 }
 0x281   :  { %307 = vst [vmem:[#allocation2] sm:$0xff] %v304_v25  ;;  %308 = vst [vmem:[#allocation2 + $0x8] sm:$0xff] %v305_v26 }
 0x282   :  { %309 = vst [vmem:[#allocation2 + $0x10] sm:$0xff] %v306_v27 }
 0x283   :  { %340 = shalt.err (!%p337_p4)
}
 0x284   :  { %s341_s13 = scalar_lea.hbm %s483_s1, 384 }
 0x285   :  { %p342_p5 = scmp.ne.s32.totalorder %s483_s1, %s341_s13  ;;  %p345_p6 = scmp.lt.u32.totalorder %s341_s13, %s483_s1 }
 0x287   :  { %p347_p7 = pnand %p345_p6, %p342_p5 }
 0x289   :  { %350 = shalt.err (!%p347_p7)
}
 0x28a   :  { %319 = dma.vmem_to_hbm [thread:$0]  %s317_s9, 384, %s483_s1, [#allocation3]  }
 0x28b   :  { %351 = dma.done.wait [#allocation3], 384  }
 0x28c   :  { %352 = vsyncadd [#allocation3], 4294966912 }
 0x28d   :  { %323 = vsyncpa [#allocation3], 1 }

</bundles_post_ra>
